<compile_context>
chip_gen: v6e
topology: v6e:2x2x1
jax: 0.10.0
libtpu: 0.0.40
codegen_flags: <defaults>
</compile_context>

<pallas_src>
import functools

import jax
import jax.numpy as jnp
from jax.experimental import pallas as pl
from jax.experimental.pallas import tpu as pltpu

NEG_SLOPE = 0.1
_VMEM_LIMIT = 48 * 1024 * 1024   # explicit scoped-VMEM limit (safe on v5e/v6e/v7x)


def _leaky(x):
    return jnp.where(x >= 0, x, NEG_SLOPE * x)


# ----------------------------------------------------------------------------
# In-kernel helpers (traced inside the Pallas kernels; everything stays in VMEM)
# ----------------------------------------------------------------------------
def _conv_im2col(x, w2, b2, K, dilation, pad):
    """'same'-padded dilated Conv1d as one matmul.

    x : (T, C_in) activations, w2 : (K*C_in, C_out) packed weight,
    b2 : (1, C_out) f32 bias.  Returns (T_out, C_out) float32.
    """
    T, C = x.shape
    if pad > 0:
        z = jnp.zeros((pad, C), x.dtype)
        xp = jnp.concatenate([z, x, z], axis=0)
    else:
        xp = x
    T_out = T + 2 * pad - (K - 1) * dilation
    cols = [xp[k * dilation: k * dilation + T_out, :] for k in range(K)]
    xcol = jnp.concatenate(cols, axis=1) if K > 1 else cols[0]
    y = jnp.dot(xcol.astype(w2.dtype), w2, preferred_element_type=jnp.float32)
    return y + b2.astype(jnp.float32)


def _upsample_polyphase(x, wt, bt):
    """ConvTranspose1d(kernel=2s, stride=s, pad=s//2+s%2, out_pad=s%2) as one
    polyphase matmul.

    x : (T, C_in); wt : (3*C_in, s*C_out) packed weights acting on
    [x[m], x[m-1], x[m+1]]; bt : (1, s*C_out) f32.  Returns (T, s*C_out) f32;
    the caller interleaves phases with a free row-major reshape to (T*s, C_out).
    """
    T, C = x.shape
    z = jnp.zeros((1, C), x.dtype)
    x_prev = jnp.concatenate([z, x[:-1, :]], axis=0)
    x_next = jnp.concatenate([x[1:, :], z], axis=0)
    xcat = jnp.concatenate([x, x_prev, x_next], axis=1)            # (T, 3*C_in)
    y = jnp.dot(xcat.astype(wt.dtype), wt, preferred_element_type=jnp.float32)
    return y + bt.astype(jnp.float32)


# ----------------------------------------------------------------------------
# Pallas kernels
# ----------------------------------------------------------------------------
def _head_kernel(x_ref, w_ref, b_ref, uw_ref, ub_ref, o_ref, *, K, pad):
    x = x_ref[0]                                                   # (T, C_in)
    h = _conv_im2col(x, w_ref[...], b_ref[...], K, 1, pad)         # input_conv
    h = _leaky(h)                                  # LeakyReLU; Dropout = identity (eval)
    y = _upsample_polyphase(h, uw_ref[...], ub_ref[...])           # upsample 0
    o_ref[0] = y.astype(o_ref.dtype)


def _block_tail_kernel(*refs, conv_meta, tail_kind, tail_meta):
    """[LeakyReLU -> RepConv] chain (one ResidualBlock) + trailing LeakyReLU,
    then either the next polyphase upsample or output_conv + Tanh."""
    x_ref, o_ref = refs[0], refs[-1]
    wrefs = refs[1:-1]
    u = x_ref[0].astype(jnp.float32)                               # (T, C)
    for j, (K, dil, pad) in enumerate(conv_meta):
        u = _leaky(u)
        u = _conv_im2col(u, wrefs[2 * j][...], wrefs[2 * j + 1][...], K, dil, pad)
    u = _leaky(u)                                  # generator's trailing non_linear
    tw, tb = wrefs[-2][...], wrefs[-1][...]
    if tail_kind == "upsample":
        y = _upsample_polyphase(u, tw, tb)
    else:                                          # output_conv + tanh
        Ko, pado = tail_meta
        y = jnp.tanh(_conv_im2col(u, tw, tb, Ko, 1, pado))
    o_ref[0] = y.astype(o_ref.dtype)


# ----------------------------------------------------------------------------
# pallas_call wrappers
# ----------------------------------------------------------------------------
def _head_call(x, conv, up, out_dtype):
    B, T, C_in = x.shape
    n_out = up["w"].shape[1]
    kernel = functools.partial(_head_kernel, K=conv["K"], pad=conv["padding"])
    return pl.pallas_call(
        kernel,
        out_shape=jax.ShapeDtypeStruct((B, T, n_out), out_dtype),
        grid=(B,),
        in_specs=[pl.BlockSpec((1, T, C_in), lambda i: (i, 0, 0)),
                  pl.BlockSpec(conv["w"].shape, lambda i: (0, 0)),
                  pl.BlockSpec(conv["b"].shape, lambda i: (0, 0)),
                  pl.BlockSpec(up["w"].shape, lambda i: (0, 0)),
                  pl.BlockSpec(up["b"].shape, lambda i: (0, 0))],
        out_specs=pl.BlockSpec((1, T, n_out), lambda i: (i, 0, 0)),
        compiler_params=pltpu.CompilerParams(
            dimension_semantics=("parallel",), vmem_limit_bytes=_VMEM_LIMIT),
    )(x, conv["w"], conv["b"], up["w"], up["b"])


def _block_call(u, convs, tail_w, tail_b, *, tail_kind, tail_meta, out_dtype):
    B, T, C = u.shape
    n_out = tail_w.shape[1]
    operands = [u]
    in_specs = [pl.BlockSpec((1, T, C), lambda i: (i, 0, 0))]
    conv_meta = []
    for cp in convs:
        operands += [cp["w"], cp["b"]]
        in_specs += [pl.BlockSpec(cp["w"].shape, lambda i: (0, 0)),
                     pl.BlockSpec(cp["b"].shape, lambda i: (0, 0))]
        conv_meta.append((cp["K"], cp["dilation"], cp["padding"]))
    operands += [tail_w, tail_b]
    in_specs += [pl.BlockSpec(tail_w.shape, lambda i: (0, 0)),
                 pl.BlockSpec(tail_b.shape, lambda i: (0, 0))]
    kernel = functools.partial(_block_tail_kernel, conv_meta=tuple(conv_meta),
                               tail_kind=tail_kind, tail_meta=tail_meta)
    return pl.pallas_call(
        kernel,
        out_shape=jax.ShapeDtypeStruct((B, T, n_out), out_dtype),
        grid=(B,),
        in_specs=in_specs,
        out_specs=pl.BlockSpec((1, T, n_out), lambda i: (i, 0, 0)),
        compiler_params=pltpu.CompilerParams(
            dimension_semantics=("parallel",), vmem_limit_bytes=_VMEM_LIMIT),
    )(*operands)


# ----------------------------------------------------------------------------
# Parameter construction (deterministic, N(0, 0.02) like reset_parameters)
# ----------------------------------------------------------------------------
def _normal(key, shape, std=0.02):
    return (std * jax.random.normal(key, shape)).astype(jnp.float32)


def make_repconv_params(key, channels, kernel_sizes, dilation):
    """Merged ("converted") RepConv: identity branch + one conv per kernel
    size (shared dilation), center-aligned into a single (Kmax, C, C) weight."""
    Kmax = max(kernel_sizes)
    w = jnp.zeros((Kmax, channels, channels), jnp.float32)
    b = jnp.zeros((channels,), jnp.float32)
    for ks in kernel_sizes:
        key, k1, k2 = jax.random.split(key, 3)
        wk = _normal(k1, (ks, channels, channels))
        bk = _normal(k2, (channels,))
        off = (Kmax - ks) // 2
        w = w.at[off:off + ks].add(wk)
        b = b + bk
    w = w.at[(Kmax - 1) // 2].add(jnp.eye(channels, dtype=jnp.float32))
    pad = (Kmax - 1) // 2 * dilation
    return {"w": w, "b": b, "dilation": dilation, "padding": pad}


def build_raw_params(key, *, in_channels, out_channels, channels, kernel_size,
                     upsample_scales, resblock_kernel_sizes, resblock_dilations):
    p = {}
    key, k1, k2 = jax.random.split(key, 3)
    p["in_w"] = _normal(k1, (kernel_size, in_channels, channels))
    p["in_b"] = _normal(k2, (channels,))
    p["ups"], p["blocks"] = [], []
    for i, scale in enumerate(upsample_scales):
        c_in = channels // (2 ** i)
        c_out = channels // (2 ** (i + 1))
        key, k1, k2 = jax.random.split(key, 3)
        p["ups"].append({"w": _normal(k1, (c_in, c_out, 2 * scale)),
                         "b": _normal(k2, (c_out,)),
                         "stride": scale, "padding": scale // 2 + scale % 2})
        stage = []
        for dil in resblock_dilations[i]:
            key, k1, k2 = jax.random.split(key, 3)
            stage.append((make_repconv_params(k1, c_out, resblock_kernel_sizes, dil),
                          make_repconv_params(k2, c_out, resblock_kernel_sizes, 1)))
        p["blocks"].append(stage)
    key, k1, k2 = jax.random.split(key, 3)
    c_last = channels // (2 ** len(upsample_scales))
    p["out_w"] = _normal(k1, (kernel_size, c_last, out_channels))
    p["out_b"] = _normal(k2, (out_channels,))
    p["kernel_size"] = kernel_size
    return p


# ----------------------------------------------------------------------------
# Weight packing (done once at build time, per performance review)
# ----------------------------------------------------------------------------
def _pack_conv(w, b, dilation, padding, dtype):
    K, C_in, C_out = w.shape
    return {"w": w.reshape(K * C_in, C_out).astype(dtype),
            "b": b.reshape(1, C_out).astype(jnp.float32),
            "K": K, "dilation": dilation, "padding": padding}


def _pack_upsample(w_t, b, scale, dtype):
    """(3*C_in, scale*C_out) polyphase matrix for ConvTranspose1d(kernel=2*scale,
    stride=scale, padding=scale//2+scale%2, output_padding=scale%2) acting on
    [x[m], x[m-1], x[m+1]].  Derivation: output index j = m*scale + p depends
    on input samples m (tap p+pad), m-1 (tap scale+p+pad, only if p < scale-pad)
    and m+1 (tap p+pad-scale, only if p >= scale-pad)."""
    c_in, c_out, _ = w_t.shape
    s = scale
    pad = s // 2 + s % 2
    w0 = jnp.zeros((c_in, s, c_out), jnp.float32)   # multiplies x[m]
    wp = jnp.zeros((c_in, s, c_out), jnp.float32)   # multiplies x[m-1]
    wn = jnp.zeros((c_in, s, c_out), jnp.float32)   # multiplies x[m+1]
    for p in range(s):
        w0 = w0.at[:, p, :].set(w_t[:, :, p + pad])
        if p < s - pad:
            wp = wp.at[:, p, :].set(w_t[:, :, s + p + pad])
        else:
            wn = wn.at[:, p, :].set(w_t[:, :, p + pad - s])
    wt = jnp.concatenate([w0.reshape(c_in, s * c_out),
                          wp.reshape(c_in, s * c_out),
                          wn.reshape(c_in, s * c_out)], axis=0).astype(dtype)
    bt = jnp.tile(b, s).reshape(1, s * c_out).astype(jnp.float32)
    return {"w": wt, "b": bt, "scale": s, "c_out": c_out}


def pack_params(raw, dtype=jnp.float32):
    ks = raw["kernel_size"]
    packed = {"dtype": dtype, "n_up": len(raw["ups"])}
    packed["head_conv"] = _pack_conv(raw["in_w"], raw["in_b"], 1, ks // 2, dtype)
    packed["ups"] = [_pack_upsample(u["w"], u["b"], u["stride"], dtype)
                     for u in raw["ups"]]
    packed["blocks"] = []
    for stage in raw["blocks"]:
        convs = []
        for rc1, rc2 in stage:
            convs.append(_pack_conv(rc1["w"], rc1["b"], rc1["dilation"],
                                    rc1["padding"], dtype))
            convs.append(_pack_conv(rc2["w"], rc2["b"], rc2["dilation"],
                                    rc2["padding"], dtype))
        packed["blocks"].append(convs)
    packed["out_conv"] = _pack_conv(raw["out_w"], raw["out_b"], 1, ks // 2, dtype)
    return packed


# ----------------------------------------------------------------------------
# Forward passes
# ----------------------------------------------------------------------------
def _interleave_phases(y, scale, c_out):
    # (B, T, scale*c_out) -> (B, T*scale, c_out): pure row-major metadata
    # reshape (free in XLA); realizes the polyphase interleave.
    B, T, _ = y.shape
    return y.reshape(B, T * scale, c_out)


def repgan_forward_pallas(packed, x_ncl):
    """x_ncl: (B, C_in, T) like PyTorch; returns (B, out_channels, T*prod(scales))."""
    dtype = packed["dtype"]
    n_up = packed["n_up"]
    x = jnp.transpose(x_ncl, (0, 2, 1)).astype(dtype)              # -> (B, T, C_in)

    # kernel 0: input_conv + LeakyReLU (+ eval Dropout) + polyphase upsample 0
    up0 = packed["ups"][0]
    y = _head_call(x, packed["head_conv"], up0, dtype)
    u = _interleave_phases(y, up0["scale"], up0["c_out"])

    # kernels 1..n_up-1: ResidualBlock + LeakyReLU + next polyphase upsample
    for i in range(1, n_up):
        up = packed["ups"][i]
        y = _block_call(u, packed["blocks"][i - 1], up["w"], up["b"],
                        tail_kind="upsample", tail_meta=None, out_dtype=dtype)
        u = _interleave_phases(y, up["scale"], up["c_out"])

    # final kernel: last ResidualBlock + LeakyReLU + output_conv + Tanh
    oc = packed["out_conv"]
    y = _block_call(u, packed["blocks"][n_up - 1], oc["w"], oc["b"],
                    tail_kind="output", tail_meta=(oc["K"], oc["padding"]),
                    out_dtype=jnp.float32)
    return jnp.transpose(y, (0, 2, 1))                             # -> (B, C_out, T')


# --- pure-JAX reference (lax conv), mirrors the PyTorch op order exactly -----
def _ref_conv1d(x, w, b, dilation=1, padding=0):
    y = jax.lax.conv_general_dilated(x, w, window_strides=(1,),
                                     padding=[(padding, padding)],
                                     rhs_dilation=(dilation,),
                                     dimension_numbers=("NWC", "WIO", "NWC"))
    return y + b


def _ref_conv_transpose1d(x, w_t, b, stride, padding):
    B, T, C_in = x.shape
    _, C_out, K = w_t.shape
    out_pad = stride % 2                       # module: output_padding = scale % 2
    L_up = (T - 1) * stride + 1
    x_up = jnp.zeros((B, L_up, C_in), x.dtype).at[:, ::stride, :].set(x)
    w_conv = jnp.transpose(w_t[:, :, ::-1], (2, 0, 1))
    y = jax.lax.conv_general_dilated(
        x_up, w_conv, window_strides=(1,),
        padding=[(K - 1 - padding, K - 1 - padding + out_pad)],
        dimension_numbers=("NWC", "WIO", "NWC"))
    return y + b


def repgan_forward_ref(params, x_ncl):
    ks = params["kernel_size"]
    x = jnp.transpose(x_ncl, (0, 2, 1))
    x = _leaky(_ref_conv1d(x, params["in_w"], params["in_b"], padding=ks // 2))
    for i in range(len(params["ups"])):
        up = params["ups"][i]
        x = _ref_conv_transpose1d(x, up["w"], up["b"], up["stride"], up["padding"])
        for rc1, rc2 in params["blocks"][i]:
            x = _leaky(x)
            x = _ref_conv1d(x, rc1["w"], rc1["b"], rc1["dilation"], rc1["padding"])
            x = _leaky(x)
            x = _ref_conv1d(x, rc2["w"], rc2["b"], rc2["dilation"], rc2["padding"])
        x = _leaky(x)
    x = jnp.tanh(_ref_conv1d(x, params["out_w"], params["out_b"], padding=ks // 2))
    return jnp.transpose(x, (0, 2, 1))


# ----------------------------------------------------------------------------
if __name__ == "__main__":
    # small config consistent with the module's constructor
    cfg = dict(in_channels=8, out_channels=1, channels=32, kernel_size=7,
               upsample_scales=(2, 2), resblock_kernel_sizes=(3, 5),
               resblock_dilations=((1, 3), (1, 3)))

    key = jax.random.PRNGKey(0)
    key, pkey, xkey = jax.random.split(key, 3)
    raw = build_raw_params(pkey, **cfg)

    B, T = 2, 16
    x = jax.random.normal(xkey, (B, cfg["in_channels"], T), dtype=jnp.float32)  # NCL

    expected_T = T
    for s in cfg["upsample_scales"]:
        expected_T *= s

    # float32 path: must closely match the pure-JAX (lax conv) reference.
    packed_f32 = pack_params(raw, dtype=jnp.float32)
    out = jax.block_until_ready(repgan_forward_pallas(packed_f32, x))
    assert out.shape == (B, cfg["out_channels"], expected_T), out.shape
    ref = jax.block_until_ready(repgan_forward_ref(raw, x))
    max_err = float(jnp.max(jnp.abs(out - ref)))
    assert jnp.allclose(out, ref, atol=5e-4, rtol=5e-4), max_err

    # bfloat16 operand path (v6e/v7x-friendly: bf16 DMA/MXU inputs, f32 accum).
    packed_bf16 = pack_params(raw, dtype=jnp.bfloat16)
    out_bf16 = jax.block_until_ready(repgan_forward_pallas(packed_bf16, x))
    assert out_bf16.shape == (B, cfg["out_channels"], expected_T)
    assert bool(jnp.all(jnp.isfinite(out_bf16)))

    print("KERNEL_OK")
</pallas_src>

<mosaic_0001>
module attributes {stable_mosaic.version = 11 : i64} {
  func.func @_head_kernel(%arg0: i32, %arg1: memref<1x16x8xf32, #tpu.memory_space<vmem>>, %arg2: memref<56x32xf32, #tpu.memory_space<vmem>>, %arg3: memref<1x32xf32, #tpu.memory_space<vmem>>, %arg4: memref<96x32xf32, #tpu.memory_space<vmem>>, %arg5: memref<1x32xf32, #tpu.memory_space<vmem>>, %arg6: memref<1x16x32xf32, #tpu.memory_space<vmem>>) attributes {dimension_semantics = [#tpu.dimension_semantics<parallel>], iteration_bounds = array<i64: 2>, scalar_prefetch = 0 : i64, scratch_operands = 0 : i64, tpu.core_type = #tpu.core_type<tc>, window_params = [{transform_indices = @transform_0, window_bounds = array<i64: 1, 16, 8>}, {pipeline_mode = #tpu.pipeline_mode<synchronous>, transform_indices = @transform_1, window_bounds = array<i64: 56, 32>}, {pipeline_mode = #tpu.pipeline_mode<synchronous>, transform_indices = @transform_2, window_bounds = array<i64: 1, 32>}, {pipeline_mode = #tpu.pipeline_mode<synchronous>, transform_indices = @transform_3, window_bounds = array<i64: 96, 32>}, {pipeline_mode = #tpu.pipeline_mode<synchronous>, transform_indices = @transform_4, window_bounds = array<i64: 1, 32>}, {transform_indices = @transform_5, window_bounds = array<i64: 1, 16, 32>}]} {
    %c0 = arith.constant 0 : index
    %c0_0 = arith.constant 0 : index
    %c0_1 = arith.constant 0 : index
    %0 = vector.load %arg1[%c0, %c0_0, %c0_1] : memref<1x16x8xf32, #tpu.memory_space<vmem>>, vector<1x16x8xf32>
    %1 = vector.shape_cast %0 : vector<1x16x8xf32> to vector<16x8xf32>
    %c0_2 = arith.constant 0 : index
    %c0_3 = arith.constant 0 : index
    %2 = vector.load %arg2[%c0_2, %c0_3] : memref<56x32xf32, #tpu.memory_space<vmem>>, vector<56x32xf32>
    %c0_4 = arith.constant 0 : index
    %c0_5 = arith.constant 0 : index
    %3 = vector.load %arg3[%c0_4, %c0_5] : memref<1x32xf32, #tpu.memory_space<vmem>>, vector<1x32xf32>
    %cst = arith.constant 0.000000e+00 : f32
    %4 = vector.broadcast %cst : f32 to vector<3x8xf32>
    %5 = tpu.concatenate %4, %1, %4 in 0 : vector<3x8xf32>, vector<16x8xf32>, vector<3x8xf32> -> vector<22x8xf32>
    %6 = vector.extract_strided_slice %5 {offsets = [0, 0], sizes = [16, 8], strides = [1, 1]} : vector<22x8xf32> to vector<16x8xf32>
    %7 = vector.extract_strided_slice %5 {offsets = [1, 0], sizes = [16, 8], strides = [1, 1]} : vector<22x8xf32> to vector<16x8xf32>
    %8 = vector.extract_strided_slice %5 {offsets = [2, 0], sizes = [16, 8], strides = [1, 1]} : vector<22x8xf32> to vector<16x8xf32>
    %9 = vector.extract_strided_slice %5 {offsets = [3, 0], sizes = [16, 8], strides = [1, 1]} : vector<22x8xf32> to vector<16x8xf32>
    %10 = vector.extract_strided_slice %5 {offsets = [4, 0], sizes = [16, 8], strides = [1, 1]} : vector<22x8xf32> to vector<16x8xf32>
    %11 = vector.extract_strided_slice %5 {offsets = [5, 0], sizes = [16, 8], strides = [1, 1]} : vector<22x8xf32> to vector<16x8xf32>
    %12 = vector.extract_strided_slice %5 {offsets = [6, 0], sizes = [16, 8], strides = [1, 1]} : vector<22x8xf32> to vector<16x8xf32>
    %13 = tpu.concatenate %6, %7, %8, %9, %10, %11, %12 in 1 : vector<16x8xf32>, vector<16x8xf32>, vector<16x8xf32>, vector<16x8xf32>, vector<16x8xf32>, vector<16x8xf32>, vector<16x8xf32> -> vector<16x56xf32>
    %cst_6 = arith.constant dense<0.000000e+00> : vector<16x32xf32>
    %14 = tpu.matmul %13, %2, %cst_6 {dimension_numbers = #tpu.dot_dimension_numbers<[1], [0], [0], [1], [0, 0, 1, 1], [], []>} : vector<16x56xf32>, vector<56x32xf32>, vector<16x32xf32> -> vector<16x32xf32>
    %15 = vector.broadcast %3 : vector<1x32xf32> to vector<16x32xf32>
    %16 = arith.addf %14, %15 : vector<16x32xf32>
    %cst_7 = arith.constant 0.000000e+00 : f32
    %17 = vector.broadcast %cst_7 : f32 to vector<16x32xf32>
    %18 = arith.cmpf oge, %16, %17 : vector<16x32xf32>
    %cst_8 = arith.constant 1.000000e-01 : f32
    %19 = vector.broadcast %cst_8 : f32 to vector<16x32xf32>
    %20 = arith.mulf %19, %16 : vector<16x32xf32>
    %21 = arith.select %18, %16, %20 : vector<16x32xi1>, vector<16x32xf32>
    %c0_9 = arith.constant 0 : index
    %c0_10 = arith.constant 0 : index
    %22 = vector.load %arg4[%c0_9, %c0_10] : memref<96x32xf32, #tpu.memory_space<vmem>>, vector<96x32xf32>
    %c0_11 = arith.constant 0 : index
    %c0_12 = arith.constant 0 : index
    %23 = vector.load %arg5[%c0_11, %c0_12] : memref<1x32xf32, #tpu.memory_space<vmem>>, vector<1x32xf32>
    %cst_13 = arith.constant 0.000000e+00 : f32
    %24 = vector.broadcast %cst_13 : f32 to vector<1x32xf32>
    %25 = vector.extract_strided_slice %21 {offsets = [0, 0], sizes = [15, 32], strides = [1, 1]} : vector<16x32xf32> to vector<15x32xf32>
    %26 = tpu.concatenate %24, %25 in 0 : vector<1x32xf32>, vector<15x32xf32> -> vector<16x32xf32>
    %27 = vector.extract_strided_slice %21 {offsets = [1, 0], sizes = [15, 32], strides = [1, 1]} : vector<16x32xf32> to vector<15x32xf32>
    %28 = tpu.concatenate %27, %24 in 0 : vector<15x32xf32>, vector<1x32xf32> -> vector<16x32xf32>
    %29 = tpu.concatenate %21, %26, %28 in 1 : vector<16x32xf32>, vector<16x32xf32>, vector<16x32xf32> -> vector<16x96xf32>
    %cst_14 = arith.constant dense<0.000000e+00> : vector<16x32xf32>
    %30 = tpu.matmul %29, %22, %cst_14 {dimension_numbers = #tpu.dot_dimension_numbers<[1], [0], [0], [1], [0, 0, 1, 1], [], []>} : vector<16x96xf32>, vector<96x32xf32>, vector<16x32xf32> -> vector<16x32xf32>
    %31 = vector.broadcast %23 : vector<1x32xf32> to vector<16x32xf32>
    %32 = arith.addf %30, %31 : vector<16x32xf32>
    %c0_15 = arith.constant 0 : index
    %c0_16 = arith.constant 0 : index
    %c0_17 = arith.constant 0 : index
    %33 = vector.load %arg6[%c0_15, %c0_16, %c0_17] : memref<1x16x32xf32, #tpu.memory_space<vmem>>, vector<1x16x32xf32>
    %34 = vector.shape_cast %33 : vector<1x16x32xf32> to vector<16x32xf32>
    %35 = vector.shape_cast %32 : vector<16x32xf32> to vector<1x16x32xf32>
    tpu.vector_store %arg6[%c0_15, %c0_16, %c0_17], %35 {strides = array<i32>} : memref<1x16x32xf32, #tpu.memory_space<vmem>>, vector<1x16x32xf32>,
    return
  }
  func.func @transform_0(%arg0: i32) -> (i32, i32, i32) {
    %c0_i32 = arith.constant 0 : i32
    %c0_i32_0 = arith.constant 0 : i32
    %c0_i32_1 = arith.constant 0 : i32
    return %arg0, %c0_i32, %c0_i32_0 : i32, i32, i32
  }
  func.func @transform_1(%arg0: i32) -> (i32, i32) {
    %c0_i32 = arith.constant 0 : i32
    %c0_i32_0 = arith.constant 0 : i32
    %c0_i32_1 = arith.constant 0 : i32
    return %c0_i32, %c0_i32_0 : i32, i32
  }
  func.func @transform_2(%arg0: i32) -> (i32, i32) {
    %c0_i32 = arith.constant 0 : i32
    %c0_i32_0 = arith.constant 0 : i32
    %c0_i32_1 = arith.constant 0 : i32
    return %c0_i32, %c0_i32_0 : i32, i32
  }
  func.func @transform_3(%arg0: i32) -> (i32, i32) {
    %c0_i32 = arith.constant 0 : i32
    %c0_i32_0 = arith.constant 0 : i32
    %c0_i32_1 = arith.constant 0 : i32
    return %c0_i32, %c0_i32_0 : i32, i32
  }
  func.func @transform_4(%arg0: i32) -> (i32, i32) {
    %c0_i32 = arith.constant 0 : i32
    %c0_i32_0 = arith.constant 0 : i32
    %c0_i32_1 = arith.constant 0 : i32
    return %c0_i32, %c0_i32_0 : i32, i32
  }
  func.func @transform_5(%arg0: i32) -> (i32, i32, i32) {
    %c0_i32 = arith.constant 0 : i32
    %c0_i32_0 = arith.constant 0 : i32
    %c0_i32_1 = arith.constant 0 : i32
    return %arg0, %c0_i32, %c0_i32_0 : i32, i32, i32
  }
}

</mosaic_0001>

<bundles_post_ra>
// kernel: tpu_custom_call.1
= control target key start
LH: loop header
LB: loop body
LE: loop exit
PB: predicated region body
PF: predicated region fallthrough
CT: control target
= control target key end

     0   :  { %10 = vsyncpa [#allocation3], 0  ;;  %s1090_s0 = inlined_call_operand.vmem [shape: f32[2,16,8], index: 0, kind: input, shape index: {}]   ;;  %s1091_s1 = inlined_call_operand.vmem [shape: f32[56,32], index: 1, kind: input, shape index: {}]   ;;  %s1092_s2 = inlined_call_operand.vmem [shape: f32[1,32], index: 2, kind: input, shape index: {}]   ;;  %s1093_s3 = inlined_call_operand.vmem [shape: f32[96,32], index: 3, kind: input, shape index: {}]   ;;  %s1094_s4 = inlined_call_operand.vmem [shape: f32[1,32], index: 4, kind: input, shape index: {}]   ;;  %s1095_s5 = inlined_call_operand.hbm [shape: f32[2,16,32], index: 5, kind: output, shape index: {}]  }
   0x1   :  { %12 = vsyncpa [#allocation3 + $0x1], 0  ;;  %s875_s18 = smov 0   ;;  %s877_s19 = smov 0  }
   0x2   :  { %s879_s20 = smov 0   ;;  %s881_s21 = smov 0  }
   0x3 LB: > { %s896_s22 = sadd.s32 4294967295, %s834_s21   ;;  %s640_s23 = sadd.s32 4294967294, %s834_s21   ;;  %s834_s21 = sphi %s881_s21, %s1101_s21   ;;  %s830_s20 = sphi %s879_s20, %s1100_s20   ;;  %s826_s19 = sphi %s877_s19, %s1099_s19   ;;  %s822_s18 = sphi %s875_s18, %s1098_s18  }
   0x4   : > { %s900_s24 = sadd.s32 1, %s834_s21   ;;  %s135_s25 = sadd.s32 1, %s830_s20 }
   0x5   : > { %s132_s26 = ssub.s32 %s834_s21, %s900_s24  ;;  %p145_p0 = scmp.ne.s32.totalorder %s830_s20, %s826_s19 }
   0x6   : > { %p133_p1 = scmp.eq.s32.totalorder %s132_s26, 0  ;;  %p146_p2 = scmp.eq.s32.totalorder %s896_s22, 1 }
   0x7   : > { %p151_p3 = scmp.ne.s32.totalorder %s826_s19, %s822_s18  ;;  %p152_p4 = scmp.eq.s32.totalorder %s640_s23, 1 }
   0x8   : > { %s911_s27 = scalar_select %p133_p1, %s830_s20, %s135_s25  }
   0x9   : > { %p913_p5 = por %p146_p2, %p145_p0  ;;  %p917_p6 = por %p152_p4, %p151_p3 }
   0xa   : > { %p643_p7 = scmp.ge.s32.totalorder %s834_s21, 1  ;;  %p190_p8 = scmp.lt.s32.totalorder %s834_s21, 3 }
   0xc   : > { %p191_p9 = pnand %p643_p7, %p190_p8 }
   0xd   : > { %p218_p10 = scmp.lt.s32.totalorder (!%p191_p9), %s896_s22, 1  ;;  %s836_s23 = smov (!%p191_p9), 16  }
   0xe   : > { %194 = sbr.rel (%p191_p9) target bundleno = 702 (0x2be), region = 40  ;;  %s837_s25 = smov (!%p191_p9), 8  }
   0xf   : > { %s838_s10 = smov (!%p191_p9), 24   ;;  %s839_s11 = smov (!%p191_p9), 32  }
  0x10   : > { %s840_s12 = smov (!%p191_p9), 40   ;;  %s841_s13 = smov (!%p191_p9), 48  }
  0x11   : > { %s843_s8 = smov (!%p191_p9), [#allocation2]  }
  0x13   : > { %s219_s30 = scalar_select %p218_p10, %s896_s22, 1  ;;  %vm235_vm0 = vcmask 1042432   ;;  %v231_v4 = vld [vmem:[%s1091_s1 + $0x30] sm:$0xff]  ;;  %vm258_vm1 = vcmask 1045504   ;;  %v230_v5 = vld [vmem:[%s1091_s1 + $0x28] sm:$0xff]  ;;  %vm246_vm2 = vcmask 1046528  }
  0x14   : > { %683 = vmatprep.subr.mxu0 %v231_v4  ;;  %v229_v15 = vld [vmem:[%s1091_s1 + $0x20] sm:$0xff]  ;;  %v228_v18 = vld [vmem:[%s1091_s1 + $0x18] sm:$0xff]  ;;  %vm270_vm3 = vcmask 1044480   ;;  %v227_v24 = vld [vmem:[%s1091_s1 + $0x10] sm:$0xff]  ;;  %vm282_vm4 = vcmask 1043456   ;;  %vm305_vm5 = vcmask 1041408  }
  0x15   : > { %s658_s6 = sshll.u32 %s219_s30, 4  ;;  %684 = vmatpush3.msra.mxu0 %v231_v4  ;;  %v226_v26 = vld [vmem:[%s1091_s1 + $0x8] sm:$0xff]  ;;  %v225_v31 = vld [vmem:[%s1091_s1] sm:$0xff]  ;;  %vm317_vm6 = vcmask 64512   ;;  %vm320_vm7 = vcmask 130048   ;;  %vm323_vm8 = vcmask 195584  }
  0x16   : > { %s222_s9 = scalar_lea.vmem %s1090_s0, %s658_s6  ;;  %685 = vmatprep.subr.mxu0 %v230_v5  ;;  %vm326_vm9 = vcmask 261120   ;;  %vm329_vm10 = vcmask 326656   ;;  %vm332_vm11 = vcmask 392192   ;;  %vm341_vm12 = vcmask 457728   ;;  %v440_v4 = vld [vmem:[%s1093_s3 + $0x58] sm:$0xff] }
  0x17   : > { %v223_v0 = vld [vmem:[%s222_s9] sm:$0xff]  ;;  %v224_v1 = vld [vmem:[%s222_s9 + $0x8] sm:$0xff]  ;;  %686 = vmatpush3.msra.mxu0 %v230_v5  ;;  %v439_v5 = vld [vmem:[%s1093_s3 + $0x50] sm:$0xff]  ;;  %700 = vmatprep.subr.mxu1 %v440_v4  ;;  %vm444_vm15 = vcmask 1040384   ;;  %s778_s9 = sshll.u32 %s843_s8, 4  ;;  %s779_s9 = int_to_ptr.vmem [resolvable:$false] %s778_s9 }
  0x18   : > { %v236_v2 = vrot.slane %v223_v0, 5  ;;  %v237_v3 = vrot.slane %v224_v1, 5  ;;  %687 = vmatprep.subr.mxu0 %v229_v15  ;;  %701 = vmatpush3.msra.mxu1 %v440_v4 }
  0x19   : > { %688 = vmatpush3.msra.mxu0 %v229_v15  ;;  %702 = vmatprep.subr.mxu1 %v439_v5  ;;  %v430_v15 = vld [vmem:[%s1093_s3 + $0x8] sm:$0xff] }
  0x1a   : > { %v935_v6 = vsel %vm235_vm0, %v236_v2, %v237_v3  ;;  %v938_v7 = vsel %vm235_vm0, 0.0, %v236_v2  ;;  %v941_v8 = vsel %vm235_vm0, %v237_v3, 0.0  ;;  %689 = vmatprep.subr.mxu0 %v228_v18  ;;  %703 = vmatpush3.msra.mxu1 %v439_v5 }
  0x1b   : > { %v259_v9 = vrot.slane %v938_v7, 2  ;;  %v260_v10 = vrot.slane %v935_v6, 2  ;;  %v247_v11 = vrot.slane %v938_v7, 1  ;;  %v248_v12 = vrot.slane %v935_v6, 1  ;;  %690 = vmatpush3.msra.mxu0 %v228_v18  ;;  %v429_v18 = vld [vmem:[%s1093_s3] sm:$0xff] }
  0x1c   : > { %v262_v13 = vrot.slane %v941_v8, 2  ;;  %v250_v14 = vrot.slane %v941_v8, 1  ;;  %v272_v19 = vrot.slane %v935_v6, 3  ;;  %v274_v22 = vrot.slane %v941_v8, 3  ;;  %691 = vmatprep.subr.mxu0 %v227_v24 }
  0x1d   : > { %v261_v16 = vsel %vm258_vm1, %v259_v9, %v260_v10  ;;  %v249_v17 = vsel %vm246_vm2, %v247_v11, %v248_v12  ;;  %v271_v23 = vrot.slane %v938_v7, 3  ;;  %v284_v25 = vrot.slane %v935_v6, 4  ;;  %692 = vmatpush3.msra.mxu0 %v227_v24  ;;  %v435_v9 = vld [vmem:[%s1093_s3 + $0x30] sm:$0xff]  ;;  %v433_v11 = vld [vmem:[%s1093_s3 + $0x20] sm:$0xff] }
  0x1e   : > { %264 = vrot.lane.b32.xlu1 %v261_v16, %s836_s23  ;;  %252 = vrot.lane.b32.xlu0 %v249_v17, %s837_s25  ;;  %v263_v20 = vsel %vm258_vm1, %v260_v10, %v262_v13  ;;  %v251_v21 = vsel %vm246_vm2, %v248_v12, %v250_v14  ;;  %v275_v27 = vsel %vm270_vm3, %v272_v19, %v274_v22  ;;  %v286_v29 = vrot.slane %v941_v8, 4  ;;  %v434_v10 = vld [vmem:[%s1093_s3 + $0x28] sm:$0xff]  ;;  %v432_v12 = vld [vmem:[%s1093_s3 + $0x18] sm:$0xff] }
  0x1f   : > { %v273_v28 = vsel %vm270_vm3, %v271_v23, %v272_v19  ;;  %v283_v30 = vrot.slane %v938_v7, 4  ;;  %693 = vmatprep.subr.mxu0 %v226_v26  ;;  %v295_v32 = vrot.slane %v935_v6, 5  ;;  %v297_v35 = vrot.slane %v941_v8, 5  ;;  %v431_v13 = vld [vmem:[%s1093_s3 + $0x10] sm:$0xff]  ;;  %v647_v14 = vld [vmem:[%s1092_s2] ss:$0 sm:$0xff] }
  0x20   : > { %v287_v33 = vsel %vm282_vm4, %v284_v25, %v286_v29  ;;  %v294_v36 = vrot.slane %v938_v7, 5  ;;  %694 = vmatpush3.msra.mxu0 %v226_v26  ;;  %v307_v37 = vrot.slane %v935_v6, 6  ;;  %v309_v40 = vrot.slane %v941_v8, 6  ;;  %v436_v8 = vld [vmem:[%s1093_s3 + $0x38] sm:$0xff] }
  0x21   : > { %v285_v34 = vsel %vm282_vm4, %v283_v30, %v284_v25  ;;  %695 = vmatprep.subr.mxu0 %v225_v31  ;;  %v298_v38 = vsel %vm235_vm0, %v295_v32, %v297_v35  ;;  %v306_v41 = vrot.slane %v938_v7, 6  ;;  %vm480_vm1 = vcmask 785408  }
  0x22   : > { %266 = vrot.lane.b32.xlu1 %v263_v20, %s836_s23  ;;  %254 = vrot.lane.b32.xlu0 %v251_v21, %s837_s25  ;;  %v296_v39 = vsel %vm235_vm0, %v294_v36, %v295_v32  ;;  %v310_v42 = vsel %vm305_vm5, %v307_v37, %v309_v40  ;;  %vm471_vm0 = vcmask 523264   ;;  %s659_s23 = sshll.u32 %s896_s22, 8 }
  0x23   : > { %696 = vmatpush3.msra.mxu0 %v225_v31  ;;  %v308_v43 = vsel %vm305_vm5, %v306_v41, %v307_v37  ;;  %v650_v41 = vld [vmem:[%s1094_s4] ss:$0 sm:$0xff]  ;;  %s1046_s6 = scalar_lea.hbm %s1095_s5, %s659_s23 }
  0x26   : > { %278 = vrot.lane.b32.xlu1 %v275_v27, %s838_s10  ;;  %276 = vrot.lane.b32.xlu0 %v273_v28, %s838_s10  ;;  %s780_s10 = scalar_lea.vmem %s779_s9, 512 }
  0x2a   : > { %290 = vrot.lane.b32.xlu1 %v287_v33, %s839_s11  ;;  %288 = vrot.lane.b32.xlu0 %v285_v34, %s839_s11 }
  0x2e   : > { %301 = vrot.lane.b32.xlu1 %v298_v38, %s840_s12  ;;  %299 = vrot.lane.b32.xlu0 %v296_v39, %s840_s12  ;;  %s842_s12 = smov 64  }
  0x32   : > { %313 = vrot.lane.b32.xlu1 %v310_v42, %s841_s13  ;;  %311 = vrot.lane.b32.xlu0 %v308_v43, %s841_s13 }
  0x90   : > { %v265_v44 = vpop.permute.xlu1 %264  ;;  %v253_v45 = vpop.permute.xlu0 %252 }
  0x91   : > { %v318_v52 = vsel %vm317_vm6, %v938_v7, %v253_v45  ;;  %v437_v7 = vld [vmem:[%s1093_s3 + $0x40] sm:$0xff] }
  0x92   : > { %v321_v57 = vsel %vm320_vm7, %v318_v52, %v265_v44 }
  0x94   : > { %v267_v46 = vpop.permute.xlu1 %266  ;;  %v255_v47 = vpop.permute.xlu0 %254 }
  0x95   : > { %v319_v53 = vsel %vm317_vm6, %v935_v6, %v255_v47  ;;  %v438_v6 = vld [vmem:[%s1093_s3 + $0x48] sm:$0xff] }
  0x96   : > { %v322_v56 = vsel %vm320_vm7, %v319_v53, %v267_v46  ;;  %704 = vmatprep.subr.mxu1 %v438_v6 }
  0x97   : > { %705 = vmatpush3.msra.mxu1 %v438_v6 }
  0x98   : > { %v279_v48 = vpop.permute.xlu1 %278  ;;  %v277_v49 = vpop.permute.xlu0 %276  ;;  %706 = vmatprep.subr.mxu1 %v437_v7 }
  0x99   : > { %v325_v58 = vsel %vm323_vm8, %v322_v56, %v279_v48  ;;  %v324_v59 = vsel %vm323_vm8, %v321_v57, %v277_v49  ;;  %707 = vmatpush3.msra.mxu1 %v437_v7 }
  0x9a   : > { %708 = vmatprep.subr.mxu1 %v436_v8 }
  0x9b   : > { %709 = vmatpush3.msra.mxu1 %v436_v8 }
  0x9c   : > { %v291_v50 = vpop.permute.xlu1 %290  ;;  %v289_v51 = vpop.permute.xlu0 %288  ;;  %710 = vmatprep.subr.mxu1 %v435_v9 }
  0x9d   : > { %v328_v60 = vsel %vm326_vm9, %v325_v58, %v291_v50  ;;  %v327_v61 = vsel %vm326_vm9, %v324_v59, %v289_v51  ;;  %711 = vmatpush3.msra.mxu1 %v435_v9 }
  0x9e   : > { %712 = vmatprep.subr.mxu1 %v434_v10 }
  0x9f   : > { %713 = vmatpush3.msra.mxu1 %v434_v10 }
  0xa0   : > { %v302_v54 = vpop.permute.xlu1 %301  ;;  %v300_v55 = vpop.permute.xlu0 %299  ;;  %714 = vmatprep.subr.mxu1 %v433_v11 }
  0xa1   : > { %v331_v62 = vsel %vm329_vm10, %v328_v60, %v302_v54  ;;  %v330_v63 = vsel %vm329_vm10, %v327_v61, %v300_v55  ;;  %715 = vmatpush3.msra.mxu1 %v433_v11 }
  0xa2   : > { %716 = vmatprep.subr.mxu1 %v432_v12 }
  0xa3   : > { %717 = vmatpush3.msra.mxu1 %v432_v12 }
  0xa4   : > { %v314_v0 = vpop.permute.xlu1 %313  ;;  %v312_v1 = vpop.permute.xlu0 %311  ;;  %718 = vmatprep.subr.mxu1 %v431_v13 }
  0xa5   : > { %v334_v2 = vsel %vm332_vm11, %v331_v62, %v314_v0  ;;  %v333_v3 = vsel %vm332_vm11, %v330_v63, %v312_v1  ;;  %719 = vmatpush3.msra.mxu1 %v431_v13 }
  0xa6   : > { %697 = vmatprep.mubr.msk.f32.mxu0 %vm341_vm12, %v333_v3  ;;  %720 = vmatprep.subr.mxu1 %v430_v15 }
  0xa7   : > { %698 = vmatmul.mubr.msk.f32.vlgmr.msra.gmra.mxu0 %vm341_vm12, %v334_v2  ;;  %721 = vmatpush3.msra.mxu1 %v430_v15 }
  0xa8   : > { %722 = vmatprep.subr.mxu1 %v429_v18 }
  0xa9   : > { %723 = vmatpush3.msra.mxu1 %v429_v18 }
 0x167   : > { %v699_v16 = vpop.f32.mrf.mxu0 }
 0x168   : > { %v420_v17 = vadd.f32 %v699_v16, %v647_v14 }
 0x169   : > { %v414_v19 = vpop.f32.mrf.mxu0 }
 0x16a   : > { %vm424_vm13 = vcmp.ge.f32.partialorder %v420_v17, 0.0  ;;  %v426_v20 = vmul.f32 0.1, %v420_v17  ;;  %v415_v21 = vadd.f32 %v647_v14, %v414_v19 }
 0x16c   : > { %v428_v22 = vsel %vm424_vm13, %v420_v17, %v426_v20  ;;  %vm423_vm14 = vcmp.ge.f32.partialorder %v415_v21, 0.0  ;;  %v425_v23 = vmul.f32 0.1, %v415_v21 }
 0x16d   : > { %v446_v26 = vrot.slane %v428_v22, 7  ;;  %v451_v30 = vrot.slane %v428_v22, 1 }
 0x16e   : > { %v427_v24 = vsel %vm423_vm14, %v415_v21, %v425_v23 }
 0x16f   : > { %v445_v25 = vrot.slane %v427_v24, 7  ;;  %v450_v29 = vrot.slane %v427_v24, 1  ;;  %v454_v32 = vsel %vm246_vm2, %v451_v30, 0.0 }
 0x171   : > { %v449_v27 = vsel %vm444_vm15, 0.0, %v445_v25  ;;  %v447_v28 = vsel %vm444_vm15, %v445_v25, %v446_v26  ;;  %v452_v31 = vsel %vm246_vm2, %v450_v29, %v451_v30 }
 0x172   : > { %456 = vrot.lane.b32.xlu0 %v449_v27, %s839_s11  ;;  %458 = vrot.lane.b32.xlu1 %v447_v28, %s839_s11  ;;  %s215_s11 = sand.u32 1, %s826_s19  }
 0x173   : > { %s644_s13 = sshll.u32 %s215_s11, 4  ;;  %s1049_s7 = scalar_lea.sflag [#allocation3], %s215_s11 }
 0x174   : > { %s217_s16 = scalar_lea.vmem [#allocation2], %s644_s13 }
 0x175   : > { %s578_s17 = sshll.u32 %s217_s16, 4  ;;  %s1040_s17 = int_to_ptr.vmem [resolvable:$true] %s578_s17 }
 0x176   : > { %463 = vrot.lane.b32.xlu0 %v452_v31, %s842_s12  ;;  %465 = vrot.lane.b32.xlu1 %v454_v32, %s842_s12  ;;  %s774_s22 = scalar_lea.vmem %s1040_s17, 256  ;;  %p781_p0 = scmp.lt.s32.totalorder %s1040_s17, %s779_s9 }
 0x177   : > { %p775_p11 = scmp.ne.s32.totalorder %s1040_s17, %s774_s22  ;;  %p782_p1 = scmp.lt.s32.totalorder %s780_s10, %s774_s22 }
 0x179   : > { %p776_p12 = pnand %p775_p11, %p913_p5  ;;  %p783_p2 = por %p782_p1, %p781_p0 }
 0x17b   : > { %p777_p13 = pneg %p776_p12 }
 0x17d   : > { %p784_p3 = pnand %p783_p2, %p777_p13 }
 0x1e4   : > { %v457_v33 = vpop.permute.xlu0 %456  ;;  %v459_v34 = vpop.permute.xlu1 %458 }
 0x1e5   : > { %v469_v35 = vsel %vm326_vm9, %v427_v24, %v457_v33  ;;  %v470_v36 = vsel %vm326_vm9, %v428_v22, %v459_v34 }
 0x1e8   : > { %v464_v37 = vpop.permute.xlu0 %463  ;;  %v466_v38 = vpop.permute.xlu1 %465 }
 0x1e9   : > { %v473_v39 = vsel %vm471_vm0, %v470_v36, %v466_v38  ;;  %v472_v40 = vsel %vm471_vm0, %v469_v35, %v464_v37 }
 0x1ea   : > { %724 = vmatprep.mubr.msk.f32.mxu1 %vm480_vm1, %v472_v40 }
 0x1eb   : > { %725 = vmatmul.mubr.msk.f32.vlgmr.msra.gmra.mxu1 %vm480_vm1, %v473_v39 }
 0x2ab   : > { %v726_v42 = vpop.f32.mrf.mxu1 }
 0x2ac   : > { %v559_v43 = vadd.f32 %v726_v42, %v650_v41 }
 0x2ad   : > { %v553_v44 = vpop.f32.mrf.mxu1 }
 0x2ae   : > { %563 = vst.msk [vmem:[%s217_s16 + $0x8] sm:$0xff] %vm326_vm9, %v559_v43  ;;  %v554_v45 = vadd.f32 %v650_v41, %v553_v44 }
 0x2b0   : > { %562 = vst.msk [vmem:[%s217_s16] sm:$0xff] %vm326_vm9, %v554_v45 }
 0x2b1   : > { %787 = shalt.err (!%p784_p3)
}
 0x2b2   : > { %s788_s12 = scalar_lea.hbm %s1046_s6, 256  ;;  %s792_s14 = scalar_lea.hbm %s1095_s5, 512 }
 0x2b3   : > { %p789_p4 = scmp.ne.s32.totalorder %s1046_s6, %s788_s12  ;;  %p793_p9 = scmp.lt.s32.totalorder %s1046_s6, %s1095_s5 }
 0x2b4   : > { %p794_p10 = scmp.lt.s32.totalorder %s792_s14, %s788_s12 }
 0x2b5   : > { %p790_p7 = pnand %p789_p4, %p913_p5 }
 0x2b6   : > { %p795_p11 = por %p794_p10, %p793_p9 }
 0x2b7   : > { %p791_p8 = pneg %p790_p7 }
 0x2b9   : > { %p796_p12 = pnand %p795_p11, %p791_p8 }
 0x2bb   : > { %799 = shalt.err (!%p796_p12)
}
 0x2bc   : > { %s844_s23 = smov 128  }
 0x2bd   : > { %727 = dma.vmem_to_hbm [thread:$0]  (%p913_p5), %s1040_s17, 256, %s1046_s6, %s1049_s7, %s844_s23, %s844_s23, %s837_s25  }
 0x2be PF: > { %p733_p13 = scmp.ge.s32.totalorder %s834_s21, 2  ;;  %s593_s26 = sand.u32 1, %s822_s18  }
 0x2bf   : > { %s594_s30 = scalar_lea.sflag [#allocation3], %s593_s26 }
 0x2c0   : > { %p730_p0 = pnand %p733_p13, %p917_p6 }
 0x2c2   : > { %p731_p1 = pneg %p730_p0 }
 0x2c4   : > { %817 = dma.done.wait (%p731_p1), %s594_s30, 256  }
 0x2c5   : > { %819 = vsyncadd (%p731_p1), %s594_s30, 4294967040  ;;  %p15_p2 = scmp.ge.s32.totalorder %s900_s24, 4   ;;  %s1098_s18 = smov %s826_s19 }
 0x2c6   : > { %s1099_s19 = smov %s830_s20  ;;  %s1100_s20 = smov %s911_s27 }
 0x2c7   : > { %s1101_s21 = smov %s900_s24  ;;  %17 = sbr.rel (!%p15_p2) target bundleno = 3 (0x3), region = 75 }
 0x2cc   :  { %599 = vsyncpa [#allocation3], 1 }
 0x2cd   :  { %601 = vsyncpa [#allocation3 + $0x1], 1 }

</bundles_post_ra>
